<compile_context>
chip_gen: v6e
topology: v6e:2x2x1
jax: 0.10.0
libtpu: 0.0.40
codegen_flags: <defaults>
</compile_context>

<pallas_src>
import functools

import jax
import jax.numpy as jnp
from jax import lax
from jax.experimental import pallas as pl
from jax.experimental.pallas import tpu as pltpu


def _round_up(x, m):
    return (x + m - 1) // m * m


def _pick_tile(dim_padded, max_tile):
    """Largest multiple of 128 that is <= max_tile and divides dim_padded."""
    t = min(max_tile, dim_padded)
    t = max((t // 128) * 128, 128)
    while dim_padded % t != 0:
        t -= 128
    return t


def _tile_caps():
    """Generation-aware tile caps for bf16 weight tiles."""
    try:
        vmem = pltpu.get_tpu_info().vmem_capacity_bytes
    except Exception:
        vmem = 64 * 1024 * 1024  # conservative: assume v7x-sized VMEM
    if vmem >= 100 * 1024 * 1024:
        # v5e / v6e: 128 MiB physical VMEM -> big weight tiles amortize the
        # ~0.35us/grid-step overhead and keep the DMA near HBM roofline.
        return 4096, 2048, 96 * 1024 * 1024
    # v7x: 64 MiB per TensorCore -> keep double-buffered live set well under.
    return 2048, 1024, 40 * 1024 * 1024


# ------------------------- kernels -------------------------

def _mlp_kernel_single_k(x_ref, w_ref, o_ref):
    # x_ref: (Bp, Kp)  w_ref: (Kp, TN)  o_ref: (Bp, TN)
    # Single K tile: no accumulator scratch, no predication.
    o_ref[...] = jnp.dot(
        x_ref[...], w_ref[...], preferred_element_type=jnp.float32
    ).astype(o_ref.dtype)


def _mlp_kernel_multi_k(x_ref, w_ref, o_ref, acc_ref, *, tk):
    # x_ref: (Bp, Kp) resident (constant block index, DMA'd once)
    # w_ref: (TK, TN) pre-transposed weight tile
    # o_ref/acc_ref: (Bp, TN); grid = (N "parallel", K "arbitrary"/reduction).
    k = pl.program_id(1)

    @pl.when(k == 0)
    def _init():
        acc_ref[...] = jnp.zeros_like(acc_ref)

    start = pl.multiple_of(k * tk, tk)
    xk = x_ref[:, pl.ds(start, tk)]
    acc_ref[...] += jnp.dot(xk, w_ref[...], preferred_element_type=jnp.float32)

    @pl.when(k == pl.num_programs(1) - 1)
    def _finalize():
        o_ref[...] = acc_ref[...].astype(o_ref.dtype)


# ------------------------- wrapper -------------------------

def prepare_mlp_weight(weight, *, compute_dtype=jnp.bfloat16):
    """One-time weight prep: cast to compute dtype, transpose to (K, N),
    pad to TPU-aligned (Kp, Np).  Do this at parameter-init time, not per call.

    weight: (output_dim, input_dim)  -- nn.Linear layout (out, in)
    returns: (w_prepared[(Kp, Np)], out_dtype, N, K)
    """
    N, K = weight.shape
    Kp = _round_up(K, 128)
    Np = _round_up(N, 128)
    w = weight.astype(compute_dtype).T  # (K, N): standard RHS, no in-kernel transpose
    if (Kp, Np) != (K, N):
        w = jnp.pad(w, ((0, Kp - K), (0, Np - N)))
    return w, weight.dtype, N, K


def modified_mlp_forward(x, x_ts, w_prepared, *, output_ch, resolution,
                         out_dtype, n_orig, k_orig,
                         compute_dtype=jnp.bfloat16):
    """Pallas equivalent of ModifiedMLP.forward (fixed_vectors=None path).

    x          : (B, input_dim)
    x_ts       : unused by the reference forward (kept for signature parity)
    w_prepared : (Kp, Np) padded/transposed weight from prepare_mlp_weight()
    returns    : (B, output_ch, resolution, resolution) in the weight's dtype
    """
    del x_ts  # unused when fixed_vectors is None

    B, K = x.shape
    Kp, Np = w_prepared.shape
    assert K == k_orig, (K, k_orig)
    assert n_orig == output_ch * resolution * resolution

    # bf16 inputs pack (16, 128) vregs -> pad B to the sublane pack.
    sub_pack = 8 * 4 // jnp.dtype(compute_dtype).itemsize
    Bp = _round_up(B, sub_pack)

    # x = x.to(weight.dtype) in the reference; we additionally drop to the
    # bf16 compute dtype (accumulation stays f32, finalize casts to out_dtype).
    x = x.astype(compute_dtype)
    if (Bp, Kp) != (B, K):
        x = jnp.pad(x, ((0, Bp - B), (0, Kp - K)))  # tiny (B x K) pad only

    tn_max, tk_max, vmem_limit = _tile_caps()
    # Keep >=2 N blocks so the "parallel" axis splits across v7x's 2 TCs.
    if Np >= 256:
        tn_max = min(tn_max, Np // 2)
    TN = _pick_tile(Np, tn_max)
    TK = _pick_tile(Kp, tk_max)

    w_bytes = jnp.dtype(compute_dtype).itemsize
    cost = pl.CostEstimate(
        flops=2 * Bp * Kp * Np,
        transcendentals=0,
        bytes_accessed=(Bp * Kp + Kp * Np) * w_bytes
        + Bp * Np * jnp.dtype(out_dtype).itemsize,
    )

    if TK == Kp:
        # Single K tile: collapse the reduction axis entirely.
        grid = (Np // TN,)
        y = pl.pallas_call(
            _mlp_kernel_single_k,
            out_shape=jax.ShapeDtypeStruct((Bp, Np), out_dtype),
            grid_spec=pltpu.PrefetchScalarGridSpec(
                num_scalar_prefetch=0,
                grid=grid,
                in_specs=[
                    pl.BlockSpec((Bp, Kp), lambda n: (0, 0)),   # x resident
                    pl.BlockSpec((Kp, TN), lambda n: (0, n)),   # weight stream
                ],
                out_specs=pl.BlockSpec((Bp, TN), lambda n: (0, n)),
            ),
            compiler_params=pltpu.CompilerParams(
                dimension_semantics=("parallel",),
                vmem_limit_bytes=vmem_limit,
            ),
            cost_estimate=cost,
        )(x, w_prepared)
    else:
        grid = (Np // TN, Kp // TK)
        y = pl.pallas_call(
            functools.partial(_mlp_kernel_multi_k, tk=TK),
            out_shape=jax.ShapeDtypeStruct((Bp, Np), out_dtype),
            grid_spec=pltpu.PrefetchScalarGridSpec(
                num_scalar_prefetch=0,
                grid=grid,
                in_specs=[
                    # x: full block, constant index -> DMA'd once, sliced in-kernel.
                    pl.BlockSpec((Bp, Kp), lambda n, k: (0, 0)),
                    # weight: (TK, TN) tile of the pre-transposed (Kp, Np) weight.
                    pl.BlockSpec((TK, TN), lambda n, k: (k, n)),
                ],
                # Output tile constant across K (reduction) -> accumulator pattern.
                out_specs=pl.BlockSpec((Bp, TN), lambda n, k: (0, n)),
                scratch_shapes=[pltpu.VMEM((Bp, TN), jnp.float32)],
            ),
            compiler_params=pltpu.CompilerParams(
                dimension_semantics=("parallel", "arbitrary"),
                vmem_limit_bytes=vmem_limit,
            ),
            cost_estimate=cost,
        )(x, w_prepared)

    # Drop padding, then x.view(B, output_ch, resolution, resolution) (NCHW).
    y = y[:B, :n_orig]
    return y.reshape(B, output_ch, resolution, resolution)


if __name__ == "__main__":
    # Small shapes consistent with the module:
    # Linear(input_dim -> output_dim), output_dim = output_ch * resolution^2.
    batch = 2
    input_dim = 100          # module default
    output_ch = 32
    resolution = 8
    output_dim = output_ch * resolution * resolution   # 2048

    key = jax.random.PRNGKey(0)
    kx, kts, kw = jax.random.split(key, 3)

    x = jax.random.normal(kx, (batch, input_dim), dtype=jnp.float32)
    x_ts = jax.random.normal(kts, (batch,), dtype=jnp.float32)  # unused by forward
    # Deterministic parameter init (nn.Linear weight layout: (out, in)).
    weight = jax.random.normal(kw, (output_dim, input_dim), dtype=jnp.float32) * 0.02

    # One-time weight prep (pad + transpose + bf16 cast) -- done at init time.
    w_prep, out_dtype, n_orig, k_orig = prepare_mlp_weight(weight)

    out = modified_mlp_forward(
        x, x_ts, w_prep,
        output_ch=output_ch, resolution=resolution,
        out_dtype=out_dtype, n_orig=n_orig, k_orig=k_orig,
    )
    out = jax.block_until_ready(out)

    # Sanity-check against a pure-JAX f32 reference of the same forward
    # (bf16 compute path -> loosen tolerance accordingly).
    ref = jnp.dot(
        x.astype(weight.dtype), weight.T, precision=lax.Precision.HIGHEST
    ).reshape(batch, output_ch, resolution, resolution)
    assert out.shape == (batch, output_ch, resolution, resolution)
    err = float(jnp.max(jnp.abs(out.astype(jnp.float32) - ref)))
    assert err < 2e-2, err

    print("KERNEL_OK")
</pallas_src>

<mosaic_0001>
module attributes {stable_mosaic.version = 11 : i64} {
  func.func @_mlp_kernel_single_k(%arg0: i32, %arg1: memref<16x128xbf16, #tpu.memory_space<vmem>>, %arg2: memref<128x1024xbf16, #tpu.memory_space<vmem>>, %arg3: memref<16x1024xf32, #tpu.memory_space<vmem>>) attributes {dimension_semantics = [#tpu.dimension_semantics<parallel>], iteration_bounds = array<i64: 2>, scalar_prefetch = 0 : i64, scratch_operands = 0 : i64, tpu.core_type = #tpu.core_type<tc>, window_params = [{pipeline_mode = #tpu.pipeline_mode<synchronous>, transform_indices = @transform_0, window_bounds = array<i64: 16, 128>}, {transform_indices = @transform_1, window_bounds = array<i64: 128, 1024>}, {transform_indices = @transform_2, window_bounds = array<i64: 16, 1024>}]} {
    %c0 = arith.constant 0 : index
    %c0_0 = arith.constant 0 : index
    %0 = vector.load %arg1[%c0, %c0_0] : memref<16x128xbf16, #tpu.memory_space<vmem>>, vector<16x128xbf16>
    %c0_1 = arith.constant 0 : index
    %c0_2 = arith.constant 0 : index
    %1 = vector.load %arg2[%c0_1, %c0_2] : memref<128x1024xbf16, #tpu.memory_space<vmem>>, vector<128x1024xbf16>
    %cst = arith.constant dense<0.000000e+00> : vector<16x1024xf32>
    %2 = tpu.matmul %0, %1, %cst {dimension_numbers = #tpu.dot_dimension_numbers<[1], [0], [0], [1], [0, 0, 1, 1], [], []>} : vector<16x128xbf16>, vector<128x1024xbf16>, vector<16x1024xf32> -> vector<16x1024xf32>
    %c0_3 = arith.constant 0 : index
    %c0_4 = arith.constant 0 : index
    %3 = vector.load %arg3[%c0_3, %c0_4] : memref<16x1024xf32, #tpu.memory_space<vmem>>, vector<16x1024xf32>
    tpu.vector_store %arg3[%c0_3, %c0_4], %2 {strides = array<i32>} : memref<16x1024xf32, #tpu.memory_space<vmem>>, vector<16x1024xf32>,
    return
  }
  func.func @transform_0(%arg0: i32) -> (i32, i32) {
    %c0_i32 = arith.constant 0 : i32
    %c0_i32_0 = arith.constant 0 : i32
    %c0_i32_1 = arith.constant 0 : i32
    return %c0_i32, %c0_i32_0 : i32, i32
  }
  func.func @transform_1(%arg0: i32) -> (i32, i32) {
    %c0_i32 = arith.constant 0 : i32
    %c0_i32_0 = arith.constant 0 : i32
    return %c0_i32, %arg0 : i32, i32
  }
  func.func @transform_2(%arg0: i32) -> (i32, i32) {
    %c0_i32 = arith.constant 0 : i32
    %c0_i32_0 = arith.constant 0 : i32
    return %c0_i32, %arg0 : i32, i32
  }
}

</mosaic_0001>

<bundles_post_ra>
// kernel: tpu_custom_call.1
= control target key start
LH: loop header
LB: loop body
LE: loop exit
PB: predicated region body
PF: predicated region fallthrough
CT: control target
= control target key end

     0   :  { %7 = vsyncpa [#allocation3], 0  ;;  %s1439_s0 = inlined_call_operand.hbm [shape: bf16[16,128], index: 0, kind: input, shape index: {}]   ;;  %s1440_s1 = inlined_call_operand.hbm [shape: bf16[128,2048], index: 1, kind: input, shape index: {}]   ;;  %s1441_s2 = inlined_call_operand.hbm [shape: f32[16,2048], index: 2, kind: output, shape index: {}]  }
   0x1   :  { %8 = vsyncpa [#allocation6], 0 }
   0x2   :  { %10 = vsyncpa [#allocation6 + $0x1], 0 }
   0x3   :  { %11 = vsyncpa [#allocation4], 0 }
   0x4   :  { %13 = vsyncpa [#allocation4 + $0x1], 0  ;;  %s1160_s9 = smov 0   ;;  %s1162_s10 = smov 0  }
   0x5   :  { %s1164_s11 = smov 0   ;;  %s1166_s12 = smov 0  }
   0x6 LB: > { %s1181_s13 = sadd.s32 4294967295, %s1131_s12   ;;  %s859_s14 = sadd.s32 4294967294, %s1131_s12   ;;  %s1131_s12 = sphi %s1166_s12, %s1463_s12   ;;  %s1127_s11 = sphi %s1164_s11, %s1462_s11   ;;  %s1123_s10 = sphi %s1162_s10, %s1461_s10   ;;  %s1119_s9 = sphi %s1160_s9, %s1460_s9  }
   0x7   : > { %s1185_s15 = sadd.s32 1, %s1131_s12   ;;  %s47_s16 = sadd.s32 1, %s1127_s11 }
   0x8   : > { %s44_s17 = ssub.s32 %s1131_s12, %s1185_s15  ;;  %p54_p0 = scmp.ne.s32.totalorder %s1127_s11, %s1123_s10 }
   0x9   : > { %p45_p1 = scmp.eq.s32.totalorder %s44_s17, 0  ;;  %p55_p2 = scmp.eq.s32.totalorder %s1131_s12, 0 }
   0xa   : > { %p60_p3 = scmp.ne.s32.totalorder %s1123_s10, %s1119_s9  ;;  %p1445_p4 = scmp.eq.s32.totalorder %s1181_s13, 0 }
   0xb   : > { %s1197_s18 = scalar_select %p45_p1, %s1127_s11, %s47_s16  }
   0xc   : > { %p1199_p5 = por %p55_p2, %p54_p0  ;;  %p1205_p6 = por %p1445_p4, %p60_p3 }
   0xd   : > { %p84_p7 = scmp.eq.s32.totalorder %s1181_s13, 1  ;;  %p90_p8 = scmp.eq.s32.totalorder %s859_s14, 1 }
   0xe   : > { %s1447_s20 = scalar_select %p1205_p6, 1, 0 }
   0xf   : > { %p860_p9 = scmp.ge.s32.totalorder %s1131_s12, 1  ;;  %p97_p10 = scmp.lt.s32.totalorder %s1131_s12, 3 }
  0x10   : > { %p1212_p11 = por %p84_p7, %p54_p0  ;;  %p1216_p12 = por %p90_p8, %p60_p3 }
  0x11   : > { %p1220_p13 = pnand %p860_p9, %p97_p10  ;;  %s1133_s24 = smov [#allocation2]  }
  0x12   : > { %s1448_s21 = scalar_select %p1212_p11, 1, 0 }
  0x13   : > { %s1449_s22 = scalar_select %p1216_p12, 1, 0 }
  0x14   : > { %s1450_s23 = scalar_select %p1220_p13, 1, 0 }
  0x15   : > { %p950_p1 = pneg %p1220_p13  ;;  %s109_s25 = sshll.u32 %s1133_s24, 4  ;;  %s110_s25 = int_to_ptr.vmem [resolvable:$true] %s109_s25 }
  0x16   : > { %p963_p3 = scmp.lt.s32.totalorder %s1131_s12, 2  ;;  %s123_s27 = sand.u32 1, %s1127_s11  }
  0x17   : > { %p1228_p2 = pnand %p950_p1, %p1445_p4  ;;  %s1020_s28 = scalar_lea.vmem %s110_s25, 128 }
  0x18   : > { %p1021_p8 = scmp.ne.s32.totalorder %s110_s25, %s1020_s28  ;;  %p1028_p12 = scmp.lt.s32.totalorder %s110_s25, %s110_s25 }
  0x19   : > { %p1011_p7 = pneg %p1228_p2  ;;  %p1029_p11 = scmp.lt.s32.totalorder %s1020_s28, %s1020_s28 }
  0x1b   : > { %p1023_p9 = pnand %p1021_p8, %p1011_p7  ;;  %p1030_p6 = por %p1029_p11, %p1028_p12 }
  0x1d   : > { %p1024_p10 = pneg %p1023_p9 }
  0x1f   : > { %p1031_p13 = pnand %p1030_p6, %p1024_p10 }
  0x21   : > { %1034 = shalt.err (!%p1031_p13)
}
  0x22   : > { %s1134_s29 = smov 64   ;;  %s1135_s30 = smov 4  }
  0x23   : > { %953 = dma.hbm_to_vmem [thread:$0]  (!%p1228_p2), %s1439_s0, 128, %s110_s25, [#allocation3], %s1134_s29, %s1134_s29, %s1135_s30  }
  0x24   : > { %p1246_p1 = pnand %p963_p3, %p1199_p5  ;;  %s863_s6 = sshll.u32 %s123_s27, 9 }
  0x25   : > { %s940_s7 = sshll.u32 %s1131_s12, 9  ;;  %s127_s17 = scalar_lea.vmem [#allocation5], %s863_s6 }
  0x26   : > { %s1254_s16 = scalar_lea.hbm %s1440_s1, %s940_s7  ;;  %s134_s24 = sshll.u32 %s127_s17, 4  ;;  %s1256_s24 = int_to_ptr.vmem [resolvable:$true] %s134_s24 }
  0x27   : > { %s1258_s19 = scalar_lea.sflag [#allocation6], %s123_s27  ;;  %s1035_s25 = scalar_lea.hbm %s1254_s16, 8192 }
  0x28   : > { %p1036_p5 = scmp.ne.s32.totalorder %s1254_s16, %s1035_s25  ;;  %p1037_p6 = pneg %p1246_p1 }
  0x29   : > { %s1040_s29 = scalar_lea.hbm %s1440_s1, 16384  ;;  %p1041_p13 = scmp.lt.s32.totalorder %s1254_s16, %s1440_s1 }
  0x2a   : > { %p1038_p11 = pnand %p1037_p6, %p1036_p5  ;;  %p1042_p2 = scmp.lt.s32.totalorder %s1040_s29, %s1035_s25 }
  0x2c   : > { %p1039_p12 = pneg %p1038_p11  ;;  %p1043_p3 = por %p1042_p2, %p1041_p13 }
  0x2e   : > { %p1044_p7 = pnand %p1043_p3, %p1039_p12 }
  0x30   : > { %1047 = shalt.err (!%p1044_p7)
}
  0x31   : > { %s1048_s27 = scalar_lea.vmem %s1256_s24, 8192  ;;  %s1136_s4 = smov [#allocation5]  }
  0x32   : > { %p1049_p8 = scmp.ne.s32.totalorder %s1256_s24, %s1048_s27  ;;  %s1053_s6 = sshll.u32 %s1136_s4, 4  ;;  %s1054_s6 = int_to_ptr.vmem [resolvable:$false] %s1053_s6 }
  0x33   : > { %s1055_s7 = scalar_lea.vmem %s1054_s6, 16384  ;;  %p1056_p5 = scmp.lt.s32.totalorder %s1256_s24, %s1054_s6 }
  0x34   : > { %p1051_p9 = pnand %p1049_p8, %p1037_p6  ;;  %p1057_p11 = scmp.lt.s32.totalorder %s1055_s7, %s1048_s27 }
  0x36   : > { %p1052_p10 = pneg %p1051_p9  ;;  %p1058_p0 = por %p1057_p11, %p1056_p5 }
  0x38   : > { %p1059_p4 = pnand %p1058_p0, %p1052_p10 }
  0x3a   : > { %1062 = shalt.err (!%p1059_p4)
}
  0x3b   : > { %s1137_s8 = smov 1024   ;;  %s1138_s14 = smov 512  }
  0x3c   : > { %s1139_s17 = smov 32   ;;  %p1453_p6 = scmp.ne.s32.totalorder %s1450_s23, 0 }
  0x3d   : > { %957 = dma.hbm_to_vmem [thread:$0]  (!%p1246_p1), %s1254_s16, 8192, %s1256_s24, %s1258_s19, %s1137_s8, %s1138_s14, %s1139_s17  }
  0x3e   : > { %146 = sbr.rel (%p1453_p6) target bundleno = 354 (0x162), region = 28  ;;  %p1454_p12 = scmp.eq.s32.totalorder (!%p1453_p6), %s1181_s13, 0 }
  0x43   : > { %1106 = dma.done.wait (%p1454_p12), [#allocation3], 128   ;;  %p1455_p13 = pmov %p1454_p12 }
  0x44   : > { %s1286_s25 = sand.u32 1, %s1123_s10   ;;  %p1456_p4 = scmp.ne.s32.totalorder %s1447_s20, 0 }
  0x45   : > { %1108 = vsyncadd (%p1455_p13), [#allocation3], 4294967168  ;;  %s868_s26 = sshll.u32 %s1286_s25, 9  ;;  %s153_s28 = scalar_lea.sflag [#allocation6], %s1286_s25 }
  0x46   : > { %s1290_s29 = scalar_lea.vmem [#allocation5], %s868_s26 }
  0x47   : > { %1110 = dma.done.wait (%p1456_p4), %s153_s28, 8192  }
  0x48   : > { %1112 = vsyncadd (%p1456_p4), %s153_s28, 4294959104  ;;  %v1140_v0 = vmov 0   ;;  %v238_v1 = vld [vmem:[%s1290_s29 + $0x1c0] sm:$0xff]  ;;  %v239_v3 = vld [vmem:[%s1290_s29 + $0x1c8] sm:$0xff]  ;;  %s869_s20 = sshll.u32 %s1286_s25, 7  ;;  %s941_s5 = sshll.u32 %s1181_s13, 10 }
  0x49   : > { %604 = vmatprep.mubr.bf16.mxu0 %v1140_v0  ;;  %647 = vmatprep.mubr.bf16.mxu1 %v1140_v0  ;;  %v242_v2 = vld [vmem:[%s1290_s29 + $0x1e0] sm:$0xff]  ;;  %v243_v5 = vld [vmem:[%s1290_s29 + $0x1e8] sm:$0xff]  ;;  %v240_v63 = vld [vmem:[%s1290_s29 + $0x1d0] sm:$0xff]  ;;  %s1371_s23 = scalar_lea.vmem [#allocation7], %s869_s20  ;;  %s1390_s30 = scalar_lea.hbm %s1441_s2, %s941_s5 }
  0x4a   : > { %v928_v4 = vcombine.high %v238_v1, %v242_v2  ;;  %v927_v6 = vcombine.low %v238_v1, %v242_v2  ;;  %v230_v7 = vld [vmem:[%s1290_s29 + $0x180] sm:$0xff]  ;;  %v930_v9 = vcombine.high %v239_v3, %v243_v5  ;;  %v929_v10 = vcombine.low %v239_v3, %v243_v5  ;;  %v231_v12 = vld [vmem:[%s1290_s29 + $0x188] sm:$0xff]  ;;  %v244_v1 = vld [vmem:[%s1290_s29 + $0x1f0] sm:$0xff]  ;;  %s774_s16 = sshll.u32 %s1371_s23, 4  ;;  %s761_s13 = scalar_lea.sflag [#allocation4], %s1286_s25  ;;  %s1393_s16 = int_to_ptr.vmem [resolvable:$true] %s774_s16 }
  0x4b   : > { %v234_v8 = vld [vmem:[%s1290_s29 + $0x1a0] sm:$0xff]  ;;  %v235_v13 = vld [vmem:[%s1290_s29 + $0x1a8] sm:$0xff]  ;;  %v241_v2 = vld [vmem:[%s1290_s29 + $0x1d8] sm:$0xff]  ;;  %s1063_s3 = scalar_lea.vmem %s1393_s16, 2048  ;;  %p1457_p1 = scmp.ne.s32.totalorder %s1448_s21, 0 }
  0x4c   : > { %v920_v11 = vcombine.high %v230_v7, %v234_v8  ;;  %v222_v14 = vld [vmem:[%s1290_s29 + $0x140] sm:$0xff]  ;;  %572 = vmatprep.subr.bf16.mxu0 %v928_v4  ;;  %v922_v15 = vcombine.high %v231_v12, %v235_v13  ;;  %v223_v17 = vld [vmem:[%s1290_s29 + $0x148] sm:$0xff]  ;;  %615 = vmatprep.subr.bf16.mxu1 %v930_v9  ;;  %v919_v19 = vcombine.low %v230_v7, %v234_v8  ;;  %v245_v3 = vld [vmem:[%s1290_s29 + $0x1f8] sm:$0xff]  ;;  %p1064_p0 = scmp.ne.s32.totalorder %s1393_s16, %s1063_s3  ;;  %s1141_s27 = smov [#allocation7]  }
  0x4d   : > { %v226_v16 = vld [vmem:[%s1290_s29 + $0x160] sm:$0xff]  ;;  %v227_v18 = vld [vmem:[%s1290_s29 + $0x168] sm:$0xff]  ;;  %573 = vmatpush1.bf16.msra.mxu0 %v927_v6  ;;  %616 = vmatpush1.bf16.msra.mxu1 %v929_v10  ;;  %v921_v20 = vcombine.low %v231_v12, %v235_v13  ;;  %v932_v6 = vcombine.high %v240_v63, %v244_v1  ;;  %v934_v7 = vcombine.high %v241_v2, %v245_v3  ;;  %v232_v8 = vld [vmem:[%s1290_s29 + $0x190] sm:$0xff]  ;;  %s1067_s4 = sshll.u32 %s1141_s27, 4  ;;  %s1068_s4 = int_to_ptr.vmem [resolvable:$false] %s1067_s4 }
  0x4e   : > { %574 = vmatprep.subr.bf16.mxu0 %v920_v11  ;;  %v912_v21 = vcombine.high %v222_v14, %v226_v16  ;;  %617 = vmatprep.subr.bf16.mxu1 %v922_v15  ;;  %v914_v22 = vcombine.high %v223_v17, %v227_v18  ;;  %v214_v23 = vld [vmem:[%s1290_s29 + $0x100] sm:$0xff]  ;;  %v215_v25 = vld [vmem:[%s1290_s29 + $0x108] sm:$0xff]  ;;  %v911_v27 = vcombine.low %v222_v14, %v226_v16  ;;  %v236_v9 = vld [vmem:[%s1290_s29 + $0x1b0] sm:$0xff]  ;;  %p1065_p2 = pnand %p1064_p0, %p1457_p1  ;;  %s1069_s6 = scalar_lea.vmem %s1068_s4, 4096 }
  0x4f   : > { %v218_v24 = vld [vmem:[%s1290_s29 + $0x120] sm:$0xff]  ;;  %v219_v26 = vld [vmem:[%s1290_s29 + $0x128] sm:$0xff]  ;;  %v913_v28 = vcombine.low %v223_v17, %v227_v18  ;;  %v1336_v10 = vld [vmem:[#allocation2] sm:$0xff]   ;;  %v931_v13 = vcombine.low %v240_v63, %v244_v1  ;;  %v933_v14 = vcombine.low %v241_v2, %v245_v3  ;;  %v924_v15 = vcombine.high %v232_v8, %v236_v9  ;;  %p1070_p7 = scmp.lt.s32.totalorder %s1393_s16, %s1068_s4  ;;  %p1071_p8 = scmp.lt.s32.totalorder %s1069_s6, %s1063_s3 }
  0x50   : > { %v904_v29 = vcombine.high %v214_v23, %v218_v24  ;;  %v906_v30 = vcombine.high %v215_v25, %v219_v26  ;;  %v206_v31 = vld [vmem:[%s1290_s29 + $0xc0] sm:$0xff]  ;;  %v207_v33 = vld [vmem:[%s1290_s29 + $0xc8] sm:$0xff]  ;;  %v903_v35 = vcombine.low %v214_v23, %v218_v24  ;;  %v905_v36 = vcombine.low %v215_v25, %v219_v26  ;;  %v233_v11 = vld [vmem:[%s1290_s29 + $0x198] sm:$0xff]  ;;  %p1066_p3 = pneg %p1065_p2 }
  0x51   : > { %575 = vmatpush1.bf16.msra.mxu0 %v919_v19  ;;  %618 = vmatpush1.bf16.msra.mxu1 %v921_v20  ;;  %v210_v32 = vld [vmem:[%s1290_s29 + $0xe0] sm:$0xff]  ;;  %v211_v34 = vld [vmem:[%s1290_s29 + $0xe8] sm:$0xff]  ;;  %v237_v12 = vld [vmem:[%s1290_s29 + $0x1b8] sm:$0xff]  ;;  %p1072_p9 = por %p1071_p8, %p1070_p7 }
  0x52   : > { %576 = vmatprep.subr.bf16.mxu0 %v912_v21  ;;  %619 = vmatprep.subr.bf16.mxu1 %v914_v22  ;;  %v896_v37 = vcombine.high %v206_v31, %v210_v32  ;;  %v898_v38 = vcombine.high %v207_v33, %v211_v34  ;;  %v198_v39 = vld [vmem:[%s1290_s29 + $0x80] sm:$0xff]  ;;  %v199_v41 = vld [vmem:[%s1290_s29 + $0x88] sm:$0xff]  ;;  %v895_v43 = vcombine.low %v206_v31, %v210_v32  ;;  %v224_v17 = vld [vmem:[%s1290_s29 + $0x150] sm:$0xff] }
  0x53   : > { %v202_v40 = vld [vmem:[%s1290_s29 + $0xa0] sm:$0xff]  ;;  %v203_v42 = vld [vmem:[%s1290_s29 + $0xa8] sm:$0xff]  ;;  %v897_v44 = vcombine.low %v207_v33, %v211_v34  ;;  %v926_v16 = vcombine.high %v233_v11, %v237_v12  ;;  %v228_v18 = vld [vmem:[%s1290_s29 + $0x170] sm:$0xff]  ;;  %v923_v21 = vcombine.low %v232_v8, %v236_v9  ;;  %v925_v22 = vcombine.low %v233_v11, %v237_v12  ;;  %p1073_p10 = pnand %p1072_p9, %p1066_p3 }
  0x54   : > { %v888_v45 = vcombine.high %v198_v39, %v202_v40  ;;  %v890_v46 = vcombine.high %v199_v41, %v203_v42  ;;  %v190_v47 = vld [vmem:[%s1290_s29 + $0x40] sm:$0xff]  ;;  %v191_v49 = vld [vmem:[%s1290_s29 + $0x48] sm:$0xff]  ;;  %v887_v51 = vcombine.low %v198_v39, %v202_v40  ;;  %v889_v52 = vcombine.low %v199_v41, %v203_v42  ;;  %v225_v19 = vld [vmem:[%s1290_s29 + $0x158] sm:$0xff] }
  0x55   : > { %577 = vmatpush1.bf16.msra.mxu0 %v911_v27  ;;  %620 = vmatpush1.bf16.msra.mxu1 %v913_v28  ;;  %v194_v48 = vld [vmem:[%s1290_s29 + $0x60] sm:$0xff]  ;;  %v195_v50 = vld [vmem:[%s1290_s29 + $0x68] sm:$0xff]  ;;  %v229_v20 = vld [vmem:[%s1290_s29 + $0x178] sm:$0xff]  ;;  %v916_v23 = vcombine.high %v224_v17, %v228_v18 }
  0x56   : > { %578 = vmatprep.subr.bf16.mxu0 %v904_v29  ;;  %621 = vmatprep.subr.bf16.mxu1 %v906_v30  ;;  %v880_v53 = vcombine.high %v190_v47, %v194_v48  ;;  %v882_v54 = vcombine.high %v191_v49, %v195_v50  ;;  %v182_v55 = vld [vmem:[%s1290_s29] sm:$0xff]  ;;  %v183_v57 = vld [vmem:[%s1290_s29 + $0x8] sm:$0xff]  ;;  %v879_v59 = vcombine.low %v190_v47, %v194_v48  ;;  %v216_v25 = vld [vmem:[%s1290_s29 + $0x110] sm:$0xff] }
  0x57   : > { %v186_v56 = vld [vmem:[%s1290_s29 + $0x20] sm:$0xff]  ;;  %v187_v58 = vld [vmem:[%s1290_s29 + $0x28] sm:$0xff]  ;;  %v881_v60 = vcombine.low %v191_v49, %v195_v50  ;;  %v918_v24 = vcombine.high %v225_v19, %v229_v20  ;;  %v220_v26 = vld [vmem:[%s1290_s29 + $0x130] sm:$0xff]  ;;  %v915_v29 = vcombine.low %v224_v17, %v228_v18  ;;  %v917_v30 = vcombine.low %v225_v19, %v229_v20 }
  0x58   : > { %v872_v61 = vcombine.high %v182_v55, %v186_v56  ;;  %v874_v62 = vcombine.high %v183_v57, %v187_v58  ;;  %v871_v4 = vcombine.low %v182_v55, %v186_v56  ;;  %v873_v5 = vcombine.low %v183_v57, %v187_v58  ;;  %v217_v27 = vld [vmem:[%s1290_s29 + $0x118] sm:$0xff]  ;;  %v208_v33 = vld [vmem:[%s1290_s29 + $0xd0] sm:$0xff] }
  0x59   : > { %579 = vmatpush1.bf16.msra.mxu0 %v903_v35  ;;  %622 = vmatpush1.bf16.msra.mxu1 %v905_v36  ;;  %v221_v28 = vld [vmem:[%s1290_s29 + $0x138] sm:$0xff]  ;;  %v908_v31 = vcombine.high %v216_v25, %v220_v26  ;;  %v212_v34 = vld [vmem:[%s1290_s29 + $0xf0] sm:$0xff] }
  0x5a   : > { %580 = vmatprep.subr.bf16.mxu0 %v896_v37  ;;  %623 = vmatprep.subr.bf16.mxu1 %v898_v38  ;;  %v910_v32 = vcombine.high %v217_v27, %v221_v28  ;;  %v209_v35 = vld [vmem:[%s1290_s29 + $0xd8] sm:$0xff]  ;;  %v907_v37 = vcombine.low %v216_v25, %v220_v26  ;;  %v900_v38 = vcombine.high %v208_v33, %v212_v34  ;;  %v200_v40 = vld [vmem:[%s1290_s29 + $0x90] sm:$0xff] }
  0x5b   : > { %v213_v36 = vld [vmem:[%s1290_s29 + $0xf8] sm:$0xff]  ;;  %v204_v41 = vld [vmem:[%s1290_s29 + $0xb0] sm:$0xff] }
  0x5c   : > { %v902_v39 = vcombine.high %v209_v35, %v213_v36  ;;  %v201_v42 = vld [vmem:[%s1290_s29 + $0x98] sm:$0xff]  ;;  %v192_v48 = vld [vmem:[%s1290_s29 + $0x50] sm:$0xff] }
  0x5d   : > { %581 = vmatpush1.bf16.msra.mxu0 %v895_v43  ;;  %624 = vmatpush1.bf16.msra.mxu1 %v897_v44  ;;  %v205_v43 = vld [vmem:[%s1290_s29 + $0xb8] sm:$0xff]  ;;  %v899_v44 = vcombine.low %v208_v33, %v212_v34  ;;  %v196_v49 = vld [vmem:[%s1290_s29 + $0x70] sm:$0xff] }
  0x5e   : > { %582 = vmatprep.subr.bf16.mxu0 %v888_v45  ;;  %625 = vmatprep.subr.bf16.mxu1 %v890_v46  ;;  %v901_v45 = vcombine.low %v209_v35, %v213_v36  ;;  %v892_v46 = vcombine.high %v200_v40, %v204_v41  ;;  %v894_v47 = vcombine.high %v201_v42, %v205_v43  ;;  %v193_v50 = vld [vmem:[%s1290_s29 + $0x58] sm:$0xff]  ;;  %v184_v56 = vld [vmem:[%s1290_s29 + $0x10] sm:$0xff] }
  0x5f   : > { %v188_v57 = vld [vmem:[%s1290_s29 + $0x30] sm:$0xff]  ;;  %v185_v58 = vld [vmem:[%s1290_s29 + $0x18] sm:$0xff] }
  0x60   : > { %v875_v1 = vcombine.low %v184_v56, %v188_v57 }
  0x61   : > { %583 = vmatpush1.bf16.msra.mxu0 %v887_v51  ;;  %626 = vmatpush1.bf16.msra.mxu1 %v889_v52  ;;  %v197_v51 = vld [vmem:[%s1290_s29 + $0x78] sm:$0xff]  ;;  %v891_v52 = vcombine.low %v200_v40, %v204_v41 }
  0x62   : > { %584 = vmatprep.subr.bf16.mxu0 %v880_v53  ;;  %627 = vmatprep.subr.bf16.mxu1 %v882_v54  ;;  %v893_v53 = vcombine.low %v201_v42, %v205_v43  ;;  %v884_v54 = vcombine.high %v192_v48, %v196_v49  ;;  %v886_v55 = vcombine.high %v193_v50, %v197_v51 }
  0x65   : > { %585 = vmatpush1.bf16.msra.mxu0 %v879_v59  ;;  %628 = vmatpush1.bf16.msra.mxu1 %v881_v60  ;;  %v189_v59 = vld [vmem:[%s1290_s29 + $0x38] sm:$0xff]  ;;  %v883_v60 = vcombine.low %v192_v48, %v196_v49 }
  0x66   : > { %586 = vmatprep.subr.bf16.mxu0 %v872_v61  ;;  %629 = vmatprep.subr.bf16.mxu1 %v874_v62  ;;  %v885_v61 = vcombine.low %v193_v50, %v197_v51  ;;  %v876_v62 = vcombine.high %v184_v56, %v188_v57  ;;  %v878_v63 = vcombine.high %v185_v58, %v189_v59 }
  0x67   : > { %v877_v2 = vcombine.low %v185_v58, %v189_v59 }
  0x69   : > { %587 = vmatpush1.bf16.msra.mxu0 %v871_v4  ;;  %630 = vmatpush1.bf16.msra.mxu1 %v873_v5 }
  0x6a   : > { %658 = vmatprep.subr.bf16.mxu0 %v932_v6  ;;  %701 = vmatprep.subr.bf16.mxu1 %v934_v7 }
  0x6c   : > { %605 = vmatmul.mubr.bf16.vlgmr.msra.gmra.mxu0 %v1336_v10  ;;  %648 = vmatmul.mubr.bf16.vlgmr.msra.gmra.mxu1 %v1336_v10 }
  0x6d   : > { %659 = vmatpush1.bf16.msra.mxu0 %v931_v13  ;;  %702 = vmatpush1.bf16.msra.mxu1 %v933_v14 }
  0x6e   : > { %660 = vmatprep.subr.bf16.mxu0 %v924_v15  ;;  %703 = vmatprep.subr.bf16.mxu1 %v926_v16 }
  0x6f   : > { %690 = vmatprep.mubr.bf16.mxu0 %v1140_v0  ;;  %733 = vmatprep.mubr.bf16.mxu1 %v1140_v0  ;;  %v909_v0 = vcombine.low %v217_v27, %v221_v28 }
  0x71   : > { %661 = vmatpush1.bf16.msra.mxu0 %v923_v21  ;;  %704 = vmatpush1.bf16.msra.mxu1 %v925_v22 }
  0x72   : > { %662 = vmatprep.subr.bf16.mxu0 %v916_v23  ;;  %705 = vmatprep.subr.bf16.mxu1 %v918_v24 }
  0x75   : > { %663 = vmatpush1.bf16.msra.mxu0 %v915_v29  ;;  %706 = vmatpush1.bf16.msra.mxu1 %v917_v30 }
  0x76   : > { %664 = vmatprep.subr.bf16.mxu0 %v908_v31  ;;  %707 = vmatprep.subr.bf16.mxu1 %v910_v32 }
  0x79   : > { %665 = vmatpush1.bf16.msra.mxu0 %v907_v37  ;;  %708 = vmatpush1.bf16.msra.mxu1 %v909_v0 }
  0x7a   : > { %666 = vmatprep.subr.bf16.mxu0 %v900_v38  ;;  %709 = vmatprep.subr.bf16.mxu1 %v902_v39 }
  0x7d   : > { %667 = vmatpush1.bf16.msra.mxu0 %v899_v44  ;;  %710 = vmatpush1.bf16.msra.mxu1 %v901_v45 }
  0x7e   : > { %668 = vmatprep.subr.bf16.mxu0 %v892_v46  ;;  %711 = vmatprep.subr.bf16.mxu1 %v894_v47 }
  0x81   : > { %669 = vmatpush1.bf16.msra.mxu0 %v891_v52  ;;  %712 = vmatpush1.bf16.msra.mxu1 %v893_v53 }
  0x82   : > { %670 = vmatprep.subr.bf16.mxu0 %v884_v54  ;;  %713 = vmatprep.subr.bf16.mxu1 %v886_v55 }
  0x85   : > { %671 = vmatpush1.bf16.msra.mxu0 %v883_v60  ;;  %714 = vmatpush1.bf16.msra.mxu1 %v885_v61 }
  0x86   : > { %672 = vmatprep.subr.bf16.mxu0 %v876_v62  ;;  %715 = vmatprep.subr.bf16.mxu1 %v878_v63 }
  0x89   : > { %673 = vmatpush1.bf16.msra.mxu0 %v875_v1  ;;  %716 = vmatpush1.bf16.msra.mxu1 %v877_v2 }
  0x8c   : > { %691 = vmatmul.mubr.bf16.vlgmr.msra.gmra.mxu0 %v1336_v10  ;;  %734 = vmatmul.mubr.bf16.vlgmr.msra.gmra.mxu1 %v1336_v10 }
 0x12c   : > { %v606_v3 = vpop.f32.mrf.mxu0  ;;  %v649_v4 = vpop.f32.mrf.mxu1 }
 0x12d   : > { %744 = vst [vmem:[%s1371_s23] sm:$0xff] %v606_v3  ;;  %746 = vst [vmem:[%s1371_s23 + $0x10] sm:$0xff] %v649_v4 }
 0x12e   : > { %v608_v5 = vpop.f32.mrf.mxu0  ;;  %v651_v6 = vpop.f32.mrf.mxu1 }
 0x12f   : > { %745 = vst [vmem:[%s1371_s23 + $0x8] sm:$0xff] %v608_v5  ;;  %747 = vst [vmem:[%s1371_s23 + $0x18] sm:$0xff] %v651_v6 }
 0x130   : > { %v610_v7 = vpop.f32.mrf.mxu0  ;;  %v653_v8 = vpop.f32.mrf.mxu1 }
 0x131   : > { %752 = vst [vmem:[%s1371_s23 + $0x40] sm:$0xff] %v610_v7  ;;  %754 = vst [vmem:[%s1371_s23 + $0x50] sm:$0xff] %v653_v8 }
 0x132   : > { %v612_v9 = vpop.f32.mrf.mxu0  ;;  %v655_v10 = vpop.f32.mrf.mxu1 }
 0x133   : > { %753 = vst [vmem:[%s1371_s23 + $0x48] sm:$0xff] %v612_v9  ;;  %755 = vst [vmem:[%s1371_s23 + $0x58] sm:$0xff] %v655_v10 }
 0x14c   : > { %v692_v11 = vpop.f32.mrf.mxu0  ;;  %v735_v12 = vpop.f32.mrf.mxu1 }
 0x14d   : > { %748 = vst [vmem:[%s1371_s23 + $0x20] sm:$0xff] %v692_v11  ;;  %750 = vst [vmem:[%s1371_s23 + $0x30] sm:$0xff] %v735_v12 }
 0x14e   : > { %v694_v13 = vpop.f32.mrf.mxu0  ;;  %v737_v14 = vpop.f32.mrf.mxu1 }
 0x14f   : > { %749 = vst [vmem:[%s1371_s23 + $0x28] sm:$0xff] %v694_v13  ;;  %751 = vst [vmem:[%s1371_s23 + $0x38] sm:$0xff] %v737_v14 }
 0x150   : > { %v696_v15 = vpop.f32.mrf.mxu0  ;;  %v739_v16 = vpop.f32.mrf.mxu1 }
 0x151   : > { %756 = vst [vmem:[%s1371_s23 + $0x60] sm:$0xff] %v696_v15  ;;  %758 = vst [vmem:[%s1371_s23 + $0x70] sm:$0xff] %v739_v16 }
 0x152   : > { %v698_v17 = vpop.f32.mrf.mxu0  ;;  %v741_v18 = vpop.f32.mrf.mxu1 }
 0x153   : > { %757 = vst [vmem:[%s1371_s23 + $0x68] sm:$0xff] %v698_v17  ;;  %759 = vst [vmem:[%s1371_s23 + $0x78] sm:$0xff] %v741_v18 }
 0x154   : > { %1076 = shalt.err (!%p1073_p10)
}
 0x155   : > { %s1077_s7 = scalar_lea.hbm %s1390_s30, 2048  ;;  %s1081_s17 = scalar_lea.hbm %s1441_s2, 4096 }
 0x156   : > { %p1078_p5 = scmp.ne.s32.totalorder %s1390_s30, %s1077_s7  ;;  %p1082_p12 = scmp.lt.s32.totalorder %s1390_s30, %s1441_s2 }
 0x157   : > { %p1083_p13 = scmp.lt.s32.totalorder %s1081_s17, %s1077_s7 }
 0x158   : > { %p1079_p11 = pnand %p1078_p5, %p1457_p1 }
 0x159   : > { %p1084_p4 = por %p1083_p13, %p1082_p12 }
 0x15a   : > { %p1080_p6 = pneg %p1079_p11 }
 0x15c   : > { %p1085_p0 = pnand %p1084_p4, %p1080_p6 }
 0x15e   : > { %1088 = shalt.err (!%p1085_p0)
}
 0x15f   : > { %s1142_s29 = smov 1024   ;;  %s1143_s20 = smov 2048  }
 0x160   : > { %s1144_s23 = smov 64  }
 0x161   : > { %948 = dma.vmem_to_hbm [thread:$0]  (%p1457_p1), %s1393_s16, 2048, %s1390_s30, %s761_s13, %s1142_s29, %s1143_s20, %s1144_s23  }
 0x162 PF: > { %s789_s5 = sand.u32 1, %s1119_s9   ;;  %p1458_p2 = scmp.ne.s32.totalorder %s1449_s22, 0 }
 0x163   : > { %p1459_p3 = scmp.ge.s32.totalorder %s1131_s12, 2  ;;  %s790_s24 = scalar_lea.sflag [#allocation4], %s789_s5 }
 0x165   : > { %p959_p7 = pnand %p1459_p3, %p1458_p2 }
 0x167   : > { %p960_p8 = pneg %p959_p7 }
 0x169   : > { %1114 = dma.done.wait (%p960_p8), %s790_s24, 2048  }
 0x16a   : > { %1116 = vsyncadd (%p960_p8), %s790_s24, 4294965248  ;;  %p16_p9 = scmp.ge.s32.totalorder %s1185_s15, 4   ;;  %s1460_s9 = smov %s1123_s10 }
 0x16b   : > { %s1461_s10 = smov %s1127_s11  ;;  %s1462_s11 = smov %s1197_s18 }
 0x16c   : > { %s1463_s12 = smov %s1185_s15  ;;  %18 = sbr.rel (!%p16_p9) target bundleno = 6 (0x6), region = 78 }
 0x171   :  { %795 = vsyncpa [#allocation3], 1 }
 0x172   :  { %797 = vsyncpa [#allocation3 + $0x1], 1 }
 0x173   :  { %798 = vsyncpa [#allocation6], 1 }
 0x174   :  { %800 = vsyncpa [#allocation6 + $0x1], 1 }
 0x175   :  { %801 = vsyncpa [#allocation4], 1 }
 0x176   :  { %803 = vsyncpa [#allocation4 + $0x1], 1 }

</bundles_post_ra>
